<compile_context>
chip_gen: v5e
topology: v5e:2x2
jax: 0.10.0
libtpu: 0.0.40
codegen_flags: <defaults>
</compile_context>

<pallas_src>
import functools

import jax
import jax.numpy as jnp
from jax.experimental import pallas as pl
from jax.experimental.pallas import tpu as pltpu


def _vmem_capacity_bytes():
    """Physical per-core VMEM; conservative fallback (v7x) if unqueryable."""
    try:
        return int(pltpu.get_tpu_info().vmem_capacity_bytes)
    except Exception:
        return 64 << 20


def _channel_attention_kernel(x_ref, w1_ref, w2_ref, o_ref, max_sc, sum_sc,
                              *, inv_hw, num_t, last_valid):
    # x_ref : (1, C, hw_tile) block of the (N, C, HW) input (native dtype)
    # w1_ref: (Cr, C)   w2_ref: (C, Cr)   o_ref: (1, C, 1)
    # max_sc / sum_sc: (C, 1) float32 running max / running sum
    t = pl.program_id(1)
    is_last = t == num_t - 1

    @pl.when(t == 0)
    def _init():
        max_sc[...] = jnp.full_like(max_sc, -jnp.inf)
        sum_sc[...] = jnp.zeros_like(sum_sc)

    x = x_ref[0]  # (C, hw_tile)

    def _accumulate(xv):
        # Per-tile lane reduce (XLU) in native dtype; cast only the (C, 1)
        # max result.  Sum accumulates in f32.
        max_sc[...] = jnp.maximum(
            max_sc[...],
            jnp.max(xv, axis=1, keepdims=True).astype(jnp.float32))
        sum_sc[...] = sum_sc[...] + jnp.sum(
            xv.astype(jnp.float32), axis=1, keepdims=True)

    if last_valid is None:
        # HW divides evenly into tiles: every tile is pure load + reduce.
        _accumulate(x)
    else:
        # Only the single partial tile pays for the mask.
        @pl.when(t != num_t - 1)
        def _steady():
            _accumulate(x)

        @pl.when(is_last)
        def _masked():
            col = jax.lax.broadcasted_iota(jnp.int32, x.shape, 1)
            valid = col < last_valid
            if jnp.issubdtype(x.dtype, jnp.floating):
                neutral = jnp.finfo(x.dtype).min
            else:
                neutral = jnp.iinfo(x.dtype).min
            xm = jnp.where(valid, x, jnp.asarray(neutral, dtype=x.dtype))
            max_sc[...] = jnp.maximum(
                max_sc[...],
                jnp.max(xm, axis=1, keepdims=True).astype(jnp.float32))
            xs = jnp.where(valid, x, jnp.zeros_like(x)).astype(jnp.float32)
            sum_sc[...] = sum_sc[...] + jnp.sum(xs, axis=1, keepdims=True)

    @pl.when(is_last)
    def _finalize():
        w1 = w1_ref[...].astype(jnp.float32)          # (Cr, C)
        w2 = w2_ref[...].astype(jnp.float32)          # (C, Cr)
        max_p = max_sc[...]                           # (C, 1)
        avg_p = sum_sc[...] * jnp.float32(inv_hw)     # (C, 1)
        # squeeze(max) + squeeze(avg) = w2 @ (relu(w1@max) + relu(w1@avg))
        h = (jnp.maximum(jnp.dot(w1, max_p, preferred_element_type=jnp.float32), 0.0)
             + jnp.maximum(jnp.dot(w1, avg_p, preferred_element_type=jnp.float32), 0.0))
        z = jnp.dot(w2, h, preferred_element_type=jnp.float32)   # (C, 1)
        o_ref[0] = jax.nn.sigmoid(z).astype(o_ref.dtype)


def channel_attention(x_nchw, w1, w2, *, hw_tile=None):
    """x_nchw: (N, C, H, W); w1: (C//r, C); w2: (C, C//r). Returns (N, C, 1, 1)."""
    n, c, h, w = x_nchw.shape
    cr = w1.shape[0]
    assert w1.shape == (cr, c) and w2.shape == (c, cr)
    hw = h * w

    # Free view: keep the NCHW layout, just flatten the spatial dims.
    x_flat = x_nchw.reshape(n, c, hw)
    itemsize = jnp.dtype(x_flat.dtype).itemsize

    # --- tile-size selection (generation-aware, lane-aligned) ---------------
    phys_vmem = _vmem_capacity_bytes()
    target_bytes = (8 << 20) if phys_vmem <= (64 << 20) else (16 << 20)
    if hw_tile is None:
        hw_tile = max(128, target_bytes // max(1, c * itemsize))
    if hw_tile >= hw:
        hw_tile = hw                                   # single full-extent tile
    else:
        hw_tile = max(128, (hw_tile // 128) * 128)     # lane-aligned tiles

    num_t = pl.cdiv(hw, hw_tile)
    rem = hw % hw_tile
    last_valid = rem if rem != 0 else None             # columns valid in last tile

    # --- VMEM budget: 2x double-buffered x block + weights + headroom -------
    block_bytes = c * hw_tile * itemsize
    w_bytes = 2 * c * cr * jnp.dtype(w1.dtype).itemsize
    vmem_limit = 2 * block_bytes + 4 * w_bytes + (6 << 20)
    vmem_limit = int(min(max(vmem_limit, 16 << 20), (phys_vmem * 3) // 4))

    kernel = functools.partial(
        _channel_attention_kernel,
        inv_hw=1.0 / hw, num_t=int(num_t), last_valid=last_valid)

    cost = pl.CostEstimate(
        flops=int(2 * n * hw * c + 6 * n * c * cr),
        transcendentals=int(n * c),
        bytes_accessed=int(n * c * hw * itemsize + w_bytes + n * c * itemsize),
    )

    out = pl.pallas_call(
        kernel,
        out_shape=jax.ShapeDtypeStruct((n, c, 1), x_flat.dtype),
        grid_spec=pltpu.PrefetchScalarGridSpec(
            num_scalar_prefetch=0,
            grid=(n, num_t),
            in_specs=[
                pl.BlockSpec((1, c, hw_tile), lambda i, t: (i, 0, t)),
                pl.BlockSpec((cr, c), lambda i, t: (0, 0)),
                pl.BlockSpec((c, cr), lambda i, t: (0, 0)),
            ],
            out_specs=pl.BlockSpec((1, c, 1), lambda i, t: (i, 0, 0)),
            scratch_shapes=[
                pltpu.VMEM((c, 1), jnp.float32),    # running max (f32, exact)
                pltpu.VMEM((c, 1), jnp.float32),    # running sum (f32)
            ],
        ),
        compiler_params=pltpu.CompilerParams(
            dimension_semantics=("parallel", "arbitrary"),
            vmem_limit_bytes=vmem_limit,
        ),
        cost_estimate=cost,
    )(x_flat, w1, w2)

    return out.reshape(n, c, 1, 1)


def _reference(x_nchw, w1, w2):
    # pure-JAX reference of the PyTorch forward (computed in f32)
    xf = x_nchw.astype(jnp.float32)
    max_p = jnp.max(xf, axis=(2, 3))
    avg_p = jnp.mean(xf, axis=(2, 3))

    def squeeze(p):
        return jnp.maximum(p @ w1.T, 0.0) @ w2.T

    return jax.nn.sigmoid(squeeze(max_p) + squeeze(avg_p))[:, :, None, None]


if __name__ == "__main__":
    # module config: channel=8, reduction=4 -> squeeze width = 2
    N, C, H, W = 2, 8, 16, 16
    REDUCTION = 4
    CR = C // REDUCTION

    key = jax.random.PRNGKey(0)
    kx, k1, k2, kx2 = jax.random.split(key, 4)

    x = jax.random.normal(kx, (N, C, H, W), dtype=jnp.float32)
    # synthetic weights matching Conv2d(C, C//r, 1) / Conv2d(C//r, C, 1)
    w1 = jax.random.normal(k1, (CR, C), dtype=jnp.float32) * 0.5
    w2 = jax.random.normal(k2, (C, CR), dtype=jnp.float32) * 0.5

    ref = _reference(x, w1, w2)

    # 1) auto tile: HW=256 fits in one block -> single reduction step
    out_auto = jax.block_until_ready(channel_attention(x, w1, w2))
    # 2) multi-step streaming reduction, HW divisible by the (128-aligned) tile
    out_div = jax.block_until_ready(channel_attention(x, w1, w2, hw_tile=128))
    for out in (out_auto, out_div):
        assert out.shape == (N, C, 1, 1)
        assert jnp.allclose(out, ref, atol=1e-5, rtol=1e-5), "mismatch vs reference"

    # 3) partial last tile: HW=144 with 128-wide tiles -> masked 16-column tail
    x2 = jax.random.normal(kx2, (N, C, 12, 12), dtype=jnp.float32)
    ref2 = _reference(x2, w1, w2)
    out_mask = jax.block_until_ready(channel_attention(x2, w1, w2, hw_tile=128))
    assert out_mask.shape == (N, C, 1, 1)
    assert jnp.allclose(out_mask, ref2, atol=1e-5, rtol=1e-5), "mismatch (masked tail)"

    # 4) bf16 streaming path (sum accumulated in f32, max exact)
    xb = x.astype(jnp.bfloat16)
    refb = _reference(xb, w1, w2)
    out_bf16 = jax.block_until_ready(channel_attention(xb, w1, w2, hw_tile=128))
    assert out_bf16.shape == (N, C, 1, 1)
    assert jnp.allclose(out_bf16.astype(jnp.float32), refb, atol=2e-2, rtol=2e-2), \
        "mismatch (bf16)"

    print("KERNEL_OK")
</pallas_src>

<mosaic_0001>
module attributes {stable_mosaic.version = 11 : i64} {
  func.func @_channel_attention_kernel(%arg0: i32, %arg1: i32, %arg2: memref<1x8x256xf32, #tpu.memory_space<vmem>>, %arg3: memref<2x8xf32, #tpu.memory_space<vmem>>, %arg4: memref<8x2xf32, #tpu.memory_space<vmem>>, %arg5: memref<1x8x1xf32, #tpu.memory_space<vmem>>, %arg6: memref<8x1xf32, #tpu.memory_space<vmem>>, %arg7: memref<8x1xf32, #tpu.memory_space<vmem>>) attributes {dimension_semantics = [#tpu.dimension_semantics<parallel>, #tpu.dimension_semantics<arbitrary>], iteration_bounds = array<i64: 2, 1>, scalar_prefetch = 0 : i64, scratch_operands = 2 : i64, tpu.core_type = #tpu.core_type<tc>, window_params = [{transform_indices = @transform_0, window_bounds = array<i64: 1, 8, 256>}, {pipeline_mode = #tpu.pipeline_mode<synchronous>, transform_indices = @transform_1, window_bounds = array<i64: 2, 8>}, {pipeline_mode = #tpu.pipeline_mode<synchronous>, transform_indices = @transform_2, window_bounds = array<i64: 8, 2>}, {transform_indices = @transform_3, window_bounds = array<i64: 1, 8, 1>}]} {
    %c0_i32 = arith.constant 0 : i32
    %0 = arith.cmpi eq, %arg1, %c0_i32 : i32
    %c0_i32_0 = arith.constant 0 : i32
    %1 = arith.cmpi eq, %arg1, %c0_i32_0 : i32
    %2 = arith.extui %1 : i1 to i32
    %c0_i32_1 = arith.constant 0 : i32
    %3 = arith.cmpi ne, %2, %c0_i32_1 : i32
    scf.if %3 {
      %cst_14 = arith.constant 0xFF800000 : f32
      %18 = vector.broadcast %cst_14 : f32 to vector<8x1xf32>
      %c0_15 = arith.constant 0 : index
      %c0_16 = arith.constant 0 : index
      %19 = vector.load %arg6[%c0_15, %c0_16] : memref<8x1xf32, #tpu.memory_space<vmem>>, vector<8x1xf32>
      tpu.vector_store %arg6[%c0_15, %c0_16], %18 {strides = array<i32>} : memref<8x1xf32, #tpu.memory_space<vmem>>, vector<8x1xf32>,
      %cst_17 = arith.constant 0.000000e+00 : f32
      %20 = vector.broadcast %cst_17 : f32 to vector<8x1xf32>
      %c0_18 = arith.constant 0 : index
      %c0_19 = arith.constant 0 : index
      %21 = vector.load %arg7[%c0_18, %c0_19] : memref<8x1xf32, #tpu.memory_space<vmem>>, vector<8x1xf32>
      tpu.vector_store %arg7[%c0_18, %c0_19], %20 {strides = array<i32>} : memref<8x1xf32, #tpu.memory_space<vmem>>, vector<8x1xf32>,
    } else {
    }
    %c0 = arith.constant 0 : index
    %c0_2 = arith.constant 0 : index
    %c0_3 = arith.constant 0 : index
    %4 = vector.load %arg2[%c0, %c0_2, %c0_3] : memref<1x8x256xf32, #tpu.memory_space<vmem>>, vector<1x8x256xf32>
    %5 = vector.shape_cast %4 : vector<1x8x256xf32> to vector<8x256xf32>
    %c0_4 = arith.constant 0 : index
    %c0_5 = arith.constant 0 : index
    %6 = vector.load %arg6[%c0_4, %c0_5] : memref<8x1xf32, #tpu.memory_space<vmem>>, vector<8x1xf32>
    %cst = arith.constant dense<0xFF800000> : vector<8xf32>
    %7 = vector.multi_reduction <maximumf>, %5, %cst [1] : vector<8x256xf32> to vector<8xf32>
    %8 = vector.shape_cast %7 : vector<8xf32> to vector<8x1xf32>
    %9 = arith.maximumf %6, %8 : vector<8x1xf32>
    %c0_6 = arith.constant 0 : index
    %c0_7 = arith.constant 0 : index
    %10 = vector.load %arg6[%c0_6, %c0_7] : memref<8x1xf32, #tpu.memory_space<vmem>>, vector<8x1xf32>
    tpu.vector_store %arg6[%c0_6, %c0_7], %9 {strides = array<i32>} : memref<8x1xf32, #tpu.memory_space<vmem>>, vector<8x1xf32>,
    %c0_8 = arith.constant 0 : index
    %c0_9 = arith.constant 0 : index
    %11 = vector.load %arg7[%c0_8, %c0_9] : memref<8x1xf32, #tpu.memory_space<vmem>>, vector<8x1xf32>
    %cst_10 = arith.constant dense<0.000000e+00> : vector<8xf32>
    %12 = vector.multi_reduction <add>, %5, %cst_10 [1] : vector<8x256xf32> to vector<8xf32>
    %13 = vector.shape_cast %12 : vector<8xf32> to vector<8x1xf32>
    %14 = arith.addf %11, %13 : vector<8x1xf32>
    %c0_11 = arith.constant 0 : index
    %c0_12 = arith.constant 0 : index
    %15 = vector.load %arg7[%c0_11, %c0_12] : memref<8x1xf32, #tpu.memory_space<vmem>>, vector<8x1xf32>
    tpu.vector_store %arg7[%c0_11, %c0_12], %14 {strides = array<i32>} : memref<8x1xf32, #tpu.memory_space<vmem>>, vector<8x1xf32>,
    %16 = arith.extui %0 : i1 to i32
    %c0_i32_13 = arith.constant 0 : i32
    %17 = arith.cmpi ne, %16, %c0_i32_13 : i32
    scf.if %17 {
      %c0_14 = arith.constant 0 : index
      %c0_15 = arith.constant 0 : index
      %18 = vector.load %arg3[%c0_14, %c0_15] : memref<2x8xf32, #tpu.memory_space<vmem>>, vector<2x8xf32>
      %c0_16 = arith.constant 0 : index
      %c0_17 = arith.constant 0 : index
      %19 = vector.load %arg4[%c0_16, %c0_17] : memref<8x2xf32, #tpu.memory_space<vmem>>, vector<8x2xf32>
      %c0_18 = arith.constant 0 : index
      %c0_19 = arith.constant 0 : index
      %20 = vector.load %arg6[%c0_18, %c0_19] : memref<8x1xf32, #tpu.memory_space<vmem>>, vector<8x1xf32>
      %c0_20 = arith.constant 0 : index
      %c0_21 = arith.constant 0 : index
      %21 = vector.load %arg7[%c0_20, %c0_21] : memref<8x1xf32, #tpu.memory_space<vmem>>, vector<8x1xf32>
      %cst_22 = arith.constant 3.906250e-03 : f32
      %22 = vector.broadcast %cst_22 : f32 to vector<8x1xf32>
      %23 = arith.mulf %21, %22 : vector<8x1xf32>
      %cst_23 = arith.constant dense<0.000000e+00> : vector<2x1xf32>
      %24 = tpu.matmul %18, %20, %cst_23 {dimension_numbers = #tpu.dot_dimension_numbers<[1], [0], [0], [1], [0, 0, 1, 1], [], []>} : vector<2x8xf32>, vector<8x1xf32>, vector<2x1xf32> -> vector<2x1xf32>
      %cst_24 = arith.constant 0.000000e+00 : f32
      %25 = vector.broadcast %cst_24 : f32 to vector<2x1xf32>
      %26 = arith.maximumf %24, %25 : vector<2x1xf32>
      %cst_25 = arith.constant dense<0.000000e+00> : vector<2x1xf32>
      %27 = tpu.matmul %18, %23, %cst_25 {dimension_numbers = #tpu.dot_dimension_numbers<[1], [0], [0], [1], [0, 0, 1, 1], [], []>} : vector<2x8xf32>, vector<8x1xf32>, vector<2x1xf32> -> vector<2x1xf32>
      %cst_26 = arith.constant 0.000000e+00 : f32
      %28 = vector.broadcast %cst_26 : f32 to vector<2x1xf32>
      %29 = arith.maximumf %27, %28 : vector<2x1xf32>
      %30 = arith.addf %26, %29 : vector<2x1xf32>
      %cst_27 = arith.constant dense<0.000000e+00> : vector<8x1xf32>
      %31 = tpu.matmul %19, %30, %cst_27 {dimension_numbers = #tpu.dot_dimension_numbers<[1], [0], [0], [1], [0, 0, 1, 1], [], []>} : vector<8x2xf32>, vector<2x1xf32>, vector<8x1xf32> -> vector<8x1xf32>
      %32 = arith.negf %31 : vector<8x1xf32>
      %33 = math.exp %32 : vector<8x1xf32>
      %cst_28 = arith.constant 1.000000e+00 : f32
      %34 = vector.broadcast %cst_28 : f32 to vector<8x1xf32>
      %35 = arith.addf %34, %33 : vector<8x1xf32>
      %36 = arith.divf %34, %35 : vector<8x1xf32>
      %c0_29 = arith.constant 0 : index
      %c0_30 = arith.constant 0 : index
      %c0_31 = arith.constant 0 : index
      %37 = vector.load %arg5[%c0_29, %c0_30, %c0_31] : memref<1x8x1xf32, #tpu.memory_space<vmem>>, vector<1x8x1xf32>
      %38 = vector.shape_cast %37 : vector<1x8x1xf32> to vector<8x1xf32>
      %39 = vector.shape_cast %36 : vector<8x1xf32> to vector<1x8x1xf32>
      tpu.vector_store %arg5[%c0_29, %c0_30, %c0_31], %39 {strides = array<i32>} : memref<1x8x1xf32, #tpu.memory_space<vmem>>, vector<1x8x1xf32>,
    } else {
    }
    return
  }
  func.func @transform_0(%arg0: i32, %arg1: i32) -> (i32, i32, i32) {
    %c0_i32 = arith.constant 0 : i32
    %c0_i32_0 = arith.constant 0 : i32
    return %arg0, %c0_i32, %arg1 : i32, i32, i32
  }
  func.func @transform_1(%arg0: i32, %arg1: i32) -> (i32, i32) {
    %c0_i32 = arith.constant 0 : i32
    %c0_i32_0 = arith.constant 0 : i32
    %c0_i32_1 = arith.constant 0 : i32
    return %c0_i32, %c0_i32_0 : i32, i32
  }
  func.func @transform_2(%arg0: i32, %arg1: i32) -> (i32, i32) {
    %c0_i32 = arith.constant 0 : i32
    %c0_i32_0 = arith.constant 0 : i32
    %c0_i32_1 = arith.constant 0 : i32
    return %c0_i32, %c0_i32_0 : i32, i32
  }
  func.func @transform_3(%arg0: i32, %arg1: i32) -> (i32, i32, i32) {
    %c0_i32 = arith.constant 0 : i32
    %c0_i32_0 = arith.constant 0 : i32
    %c0_i32_1 = arith.constant 0 : i32
    return %arg0, %c0_i32, %c0_i32_0 : i32, i32, i32
  }
}

</mosaic_0001>

<bundles_post_ra>
// kernel: tpu_custom_call.1
= control target key start
LH: loop header
LB: loop body
LE: loop exit
PB: predicated region body
PF: predicated region fallthrough
CT: control target
= control target key end

     0   :  { %8 = vsyncpa [#allocation5], 0  ;;  %s689_s0 = inlined_call_operand.hbm [shape: f32[2,8,256], index: 0, kind: input, shape index: {}]   ;;  %s690_s1 = inlined_call_operand.vmem [shape: f32[2,8], index: 1, kind: input, shape index: {}]   ;;  %s691_s2 = inlined_call_operand.vmem [shape: f32[8,2], index: 2, kind: input, shape index: {}]   ;;  %s692_s3 = inlined_call_operand.vmem [shape: f32[2,8,1], index: 3, kind: output, shape index: {}]  }
   0x1   :  { %10 = vsyncpa [#allocation5 + $0x1], 0  ;;  %s590_s12 = smov 0   ;;  %s592_s13 = smov 0  }
   0x2   :  { %s594_s14 = smov 0   ;;  %s596_s15 = smov 0  }
   0x3   :  { %s598_s16 = smov 0   ;;  %s600_s17 = smov 0  }
   0x4 LB: > { %s407_s18 = sadd.s32 4294967295, %s566_s17   ;;  %s28_s19 = sadd.s32 1, %s562_s16  ;;  %s566_s17 = sphi %s600_s17, %s16_s17   ;;  %s562_s16 = sphi %s598_s16, %s699_s16   ;;  %s558_s15 = sphi %s596_s15, %s698_s15   ;;  %s554_s14 = sphi %s594_s14, %s697_s14   ;;  %s550_s13 = sphi %s592_s13, %s696_s13   ;;  %s546_s12 = sphi %s590_s12, %s695_s12  }
   0x5   : > { %p30_p0 = scmp.ge.s32.totalorder %s28_s19, 2  ;;  %s37_s20 = sadd.s32 1, %s554_s14 }
   0x6   : > { %p44_p1 = scmp.ne.s32.totalorder %s554_s14, %s550_s13  ;;  %p45_p2 = scmp.eq.s32.totalorder %s566_s17, 0 }
   0x7   : > { %s701_s19 = smov (%p30_p0, %s28_s19), 0  ;;  %p50_p4 = scmp.ne.s32.totalorder %s550_s13, %s546_s12 }
   0x8   : > { %p626_p3 = por %p45_p2, %p44_p1  ;;  %s32_s22 = ssub.s32 %s562_s16, %s701_s19 }
   0x9   : > { %p51_p5 = scmp.eq.s32.totalorder %s407_s18, 0  ;;  %p35_p6 = scmp.eq.s32.totalorder %s32_s22, 0 }
   0xa   : > { %p431_p8 = scmp.lt.s32.totalorder %s566_s17, 2  ;;  %s148_s25 = sand.u32 1, %s554_s14  }
   0xb   : > { %p633_p7 = por %p51_p5, %p50_p4  ;;  %s424_s26 = sshll.u32 %s562_s16, 4 }
   0xc   : > { %s639_s24 = scalar_select %p35_p6, %s554_s14, %s37_s20  }
   0xd   : > { %s411_s27 = sshll.u32 %s148_s25, 4  ;;  %s159_s30 = scalar_lea.hbm %s689_s0, %s424_s26 }
   0xe   : > { %s161_s4 = sshll.u32 %s159_s30, 4  ;;  %s152_s5 = scalar_lea.vmem [#allocation4], %s411_s27  ;;  %s162_s4 = int_to_ptr.hbm [resolvable:$true] %s161_s4 }
   0xf   : > { %s163_s6 = sshll.u32 %s152_s5, 4  ;;  %p428_p9 = pnand %p431_p8, %p626_p3  ;;  %s164_s6 = int_to_ptr.vmem [resolvable:$true] %s163_s6 }
  0x10   : > { %p414_p10 = scmp.ge.s32.totalorder %s566_s17, 1  ;;  %p168_p11 = scmp.lt.s32.totalorder %s566_s17, 3 }
  0x11   : > { %s149_s7 = scalar_lea.sflag [#allocation5], %s148_s25 }
  0x12   : > { %430 = dma.hbm_to_vmem [thread:$0]  (!%p428_p9), %s162_s4, 256, %s164_s6, %s149_s7  }
  0x13   : > { %p169_p12 = pnand %p414_p10, %p168_p11 }
  0x14   : > { %s174_s8 = sand.u32 (!%p169_p12), 1, %s550_s13  }
  0x15   : > { %172 = sbr.rel (%p169_p12) target bundleno = 457 (0x1c9), region = 32  ;;  %s415_s9 = sshll.u32 (!%p169_p12), %s174_s8, 4 }
  0x16   : > { %s175_s10 = scalar_lea.sflag (!%p169_p12), [#allocation5], %s174_s8  ;;  %s178_s11 = scalar_lea.vmem (!%p169_p12), [#allocation4], %s415_s9 }
  0x1a   : > { %541 = dma.done.wait (%p633_p7), %s175_s10, 256  }
  0x1b   : > { %543 = vsyncadd (%p633_p7), %s175_s10, 4294967040  ;;  %vm210_vm0 = vcmask 7168   ;;  %v568_v0 = vmov 0.0   ;;  %v213_v1 = vld [vmem:[%s178_s11] sm:$0xff]  ;;  %v214_v2 = vld [vmem:[%s178_s11 + $0x8] sm:$0xff]  ;;  %v569_v5 = vmov -inf  }
  0x1c   : > { %212 = vst.msk [vmem:[#allocation3] sm:$0xff] %vm210_vm0, %v568_v0  ;;  %v223_v3 = vadd.f32 %v214_v2, %v213_v1  ;;  %v216_v4 = vmax.f32 %v213_v1, %v214_v2  ;;  %v231_v14 = vld [vmem:[%s690_s1] sm:$0x3]  ;;  %vm236_vm1 = vcmask 64512   ;;  %vm287_vm2 = vcmask 1041408   ;;  %p202_p13 = scmp.lt.s32.totalorder %s558_s15, 1 }
  0x1d   : > { %211 = vst.msk [vmem:[#allocation2] sm:$0xff] %vm210_vm0, %v569_v5  ;;  %v232_v21 = vld [vmem:[%s691_s2] sm:$0xff]  ;;  %vm283_vm3 = vcmask 15360  }
  0x1e   : > { %224 = vadd.xlane.f32.xlu0 %v223_v3  ;;  %s703_s15 = smov (!%p202_p13, %s558_s15), 1 }
  0x1f   : > { %s416_s22 = sshll.u32 %s703_s15, 3 }
  0x20   : > { %s205_s26 = scalar_lea.vmem %s692_s3, %s416_s22 }
  0x23   : > { %v222_v6 = vld [vmem:[#allocation3] sm:$0xff] }
  0x24   : > { %v215_v9 = vld [vmem:[#allocation2] sm:$0xff] }
  0x26   : > { %217 = vmax.xlane.f32.xlu0 %v216_v4 }
  0x91   : > { %v225_v7 = vpop.xlane.xlu0 %224 }
  0x92   : > { %v226_v8 = vadd.f32 %v225_v7, %v222_v6 }
  0x94   : > { %227 = vst.msk [vmem:[#allocation3] sm:$0xff] %vm210_vm0, %v226_v8 }
  0x99   : > { %v218_v10 = vpop.xlane.xlu0 %217 }
  0x9a   : > { %v219_v11 = vmax.f32 %v215_v9, %v218_v10 }
  0x9b   : > { %v234_v12 = vld [vmem:[#allocation3] sm:$0xff] }
  0x9c   : > { %221 = vst.msk [vmem:[#allocation2] sm:$0xff] %vm210_vm0, %v219_v11  ;;  %v235_v13 = vmul.f32 0.00390625, %v234_v12 }
  0x9e   : > { %276 = vmatpush.msra.mxu1 %v235_v13 }
  0x9f   : > { %418 = vmatmul.msk.f32.vlgmr.msra.gmra.mxu1 %vm236_vm1, %v231_v14 }
  0xa3   : > { %v233_v15 = vld [vmem:[#allocation2] sm:$0xff] }
  0xa4   : > { %255 = vmatpush.msra.mxu0 %v233_v15 }
  0xa5   : > { %417 = vmatmul.msk.f32.vlgmr.msra.gmra.mxu0 %vm236_vm1, %v231_v14 }
 0x11c   : > { %v278_v16 = vpop.f32.mrf.mxu1 }
 0x11d   : > { %v281_v17 = vmax.f32 %v278_v16, 0.0 }
 0x122   : > { %v257_v18 = vpop.f32.mrf.mxu0 }
 0x123   : > { %v260_v19 = vmax.f32 %v257_v18, 0.0 }
 0x125   : > { %v282_v20 = vadd.f32 %v281_v17, %v260_v19 }
 0x127   : > { %419 = vmatpush.msk.msra.mxu2 %vm287_vm2, %v282_v20 }
 0x128   : > { %420 = vmatmul.msk.f32.vlgmr.msra.gmra.mxu2 %vm283_vm3, %v232_v21 }
 0x1ab   : > { %v308_v22 = vpop.f32.mrf.mxu2 }
 0x1ac   : > { %v421_v23 = vmul.f32 -1.442695, %v308_v22 }
 0x1ae   : > { %482 = vpow2.f32 %v421_v23 }
 0x1b4   : > { %v483_v24 = vpop.eup %482 }
 0x1b5   : > { %v314_v25 = vadd.f32 1.0, %v483_v24 }
 0x1b7   : > { %484 = vrcp.f32 %v314_v25  ;;  %v326_v29 = vand.u32 2147483648, %v314_v25  ;;  %v324_v31 = vand.u32 2147483647, %v314_v25  ;;  %vm320_vm5 = vweird.f32 %v314_v25 }
 0x1b9   : > { %v327_v33 = vor.u32 1.1754944e-38, %v326_v29  ;;  %vm325_vm7 = vcmp.eq.f32.partialorder %v324_v31, 8.507059e+37 }
 0x1bd   : > { %v485_v26 = vpop.eup %484 }
 0x1be   : > { %v316_v27 = vmul.f32 %v485_v26, %v314_v25  ;;  %vm321_vm4 = vweird.f32 %v485_v26 }
 0x1bf   : > { %vm322_vm6 = vmor %vm320_vm5, %vm321_vm4 }
 0x1c0   : > { %v317_v28 = vsub.f32 1.0, %v316_v27 }
 0x1c2   : > { %v318_v30 = vmul.f32 %v485_v26, %v317_v28 }
 0x1c4   : > { %v319_v32 = vadd.f32 %v485_v26, %v318_v30 }
 0x1c6   : > { %v323_v34 = vsel %vm322_vm6, %v485_v26, %v319_v32 }
 0x1c7   : > { %v328_v35 = vsel %vm325_vm7, %v327_v33, %v323_v34 }
 0x1c8   : > { %330 = vst.msk [vmem:[%s205_s26] sm:$0xff] %vm210_vm0, %v328_v35 }
 0x1c9 PF: > { %s16_s17 = sadd.s32 1, %s566_s17   ;;  %s695_s12 = smov %s550_s13 }
 0x1ca   : > { %p13_p0 = scmp.ge.s32.totalorder %s16_s17, 4   ;;  %s696_s13 = smov %s554_s14 }
 0x1cb   : > { %s697_s14 = smov %s639_s24  ;;  %s698_s15 = smov %s562_s16 }
 0x1cc   : > { %s699_s16 = smov %s701_s19  ;;  %15 = sbr.rel (!%p13_p0) target bundleno = 4 (0x4), region = 80 }
 0x1d1   :  { %350 = vsyncpa [#allocation5], 1 }
 0x1d2   :  { %352 = vsyncpa [#allocation5 + $0x1], 1 }

</bundles_post_ra>
